<compile_context>
chip_gen: v6e
topology: v6e:2x2x1
jax: 0.10.0
libtpu: 0.0.40
codegen_flags: <defaults>
</compile_context>

<pallas_src>
import functools

import jax
import jax.numpy as jnp
from jax.experimental import pallas as pl
from jax.experimental.pallas import tpu as pltpu


def _dropout_kernel(seed_ref, x_ref, o_ref, *, p, tile_r, lane):
    x = x_ref[...]
    shape = x.shape  # (tile_r, lane)

    # Global flat index of every element in this tile (uint32; wraparound is
    # harmless for hashing purposes).
    row0 = pl.program_id(0).astype(jnp.uint32) * jnp.uint32(tile_r)
    rows = jax.lax.broadcasted_iota(jnp.uint32, shape, 0) + row0
    cols = jax.lax.broadcasted_iota(jnp.uint32, shape, 1)
    idx = rows * jnp.uint32(lane) + cols

    # Counter-based PRNG: seed-mixed lowbias32 hash -> uniform uint32 bits.
    seed32 = seed_ref[0].astype(jnp.uint32)
    h = idx ^ (seed32 * jnp.uint32(0x9E3779B9))
    h = (h ^ (h >> jnp.uint32(16))) * jnp.uint32(0x7FEB352D)
    h = (h ^ (h >> jnp.uint32(15))) * jnp.uint32(0x846CA68B)
    h = h ^ (h >> jnp.uint32(16))

    # Drop with probability p via a direct integer threshold compare.
    thresh = jnp.uint32(min(int(round(p * 2.0**32)), 2**32 - 1))
    keep = h >= thresh

    # Mask + scale in the native dtype (no f32 upcast on bf16/f16 inputs).
    scale = jnp.asarray(1.0 / (1.0 - p), dtype=x.dtype)
    o_ref[...] = jnp.where(keep, x * scale, jnp.zeros((), dtype=x.dtype))


def dropout(x, p, seed, training=True):
    """Pallas TPU dropout matching torch.nn.Dropout(p) forward semantics."""
    if (not training) or p <= 0.0:
        return x
    if p >= 1.0:
        return jnp.zeros_like(x)

    orig_shape = x.shape
    n = x.size
    lane = 128
    rows = -(-n // lane)
    pad = rows * lane - n
    x_flat = x.reshape(-1)
    if pad:
        # TODO(synk): handle the ragged tail with an in-kernel masked store
        # instead of this host-side pad copy (only triggers when n % 128 != 0).
        x_flat = jnp.pad(x_flat, (0, pad))
    x2d = x_flat.reshape(rows, lane)

    # ~2 MiB f32 tiles (4096 rows x 128 lanes).  Double-buffered in+out is
    # ~8 MiB live: fits v5e's 16 MiB default scoped VMEM, leaves plenty of
    # headroom on v6e (32 MiB scoped) and v7x (64 MiB physical per TC).
    tile_r = min(rows, 4096)
    grid = (pl.cdiv(rows, tile_r),)

    seed_arr = jnp.array([seed], dtype=jnp.int32)
    kernel = functools.partial(_dropout_kernel, p=float(p), tile_r=tile_r, lane=lane)

    out2d = pl.pallas_call(
        kernel,
        out_shape=jax.ShapeDtypeStruct((rows, lane), x.dtype),
        grid=grid,
        in_specs=[
            pl.BlockSpec(memory_space=pltpu.SMEM),          # seed scalar
            pl.BlockSpec((tile_r, lane), lambda i: (i, 0)),  # x tile
        ],
        out_specs=pl.BlockSpec((tile_r, lane), lambda i: (i, 0)),
        input_output_aliases={1: 0},  # x may be overwritten in place
        compiler_params=pltpu.CompilerParams(
            dimension_semantics=("parallel",),
        ),
    )(seed_arr, x2d)

    out = out2d.reshape(-1)
    if pad:
        out = out[:n]
    return out.reshape(orig_shape)


if __name__ == "__main__":
    p = 0.3
    key = jax.random.PRNGKey(0)
    # NCHW input, as the PyTorch module would receive.
    x = jax.random.normal(key, (2, 4, 16, 16), dtype=jnp.float32)

    y = dropout(x, p=p, seed=1234, training=True)
    y = jax.block_until_ready(y)

    # Sanity checks on dropout semantics.
    assert y.shape == x.shape and y.dtype == x.dtype
    scale = jnp.float32(1.0 / (1.0 - p))
    nonzero = y != 0.0
    # Survivors must be exactly x * (1 / (1 - p)).
    max_err = float(jnp.max(jnp.where(nonzero, jnp.abs(y - x * scale), 0.0)))
    assert max_err < 1e-6, max_err
    zero_frac = float(jnp.mean((y == 0.0).astype(jnp.float32)))
    assert 0.1 < zero_frac < 0.6, zero_frac  # roughly p of elements dropped

    # Eval / p=0 paths are identity.
    assert bool(jnp.all(dropout(x, p=p, seed=1234, training=False) == x))

    print("KERNEL_OK")
</pallas_src>

<mosaic_0001>
module attributes {stable_mosaic.version = 11 : i64} {
  func.func @_dropout_kernel(%arg0: i32, %arg1: memref<1xi32, #tpu.memory_space<smem>>, %arg2: memref<16x128xf32, #tpu.memory_space<vmem>>, %arg3: memref<16x128xf32, #tpu.memory_space<vmem>>) attributes {dimension_semantics = [#tpu.dimension_semantics<parallel>], iteration_bounds = array<i64: 1>, scalar_prefetch = 0 : i64, scratch_operands = 0 : i64, tpu.core_type = #tpu.core_type<tc>, window_params = [{transform_indices = @transform_0, window_bounds = array<i64: 1>}, {transform_indices = @transform_1, window_bounds = array<i64: 16, 128>}, {transform_indices = @transform_2, window_bounds = array<i64: 16, 128>}]} {
    %c0 = arith.constant 0 : index
    %c0_0 = arith.constant 0 : index
    %0 = vector.load %arg2[%c0, %c0_0] : memref<16x128xf32, #tpu.memory_space<vmem>>, vector<16x128xf32>
    %c16_i32 = arith.constant 16 : i32
    %1 = arith.muli %arg0, %c16_i32 : i32
    %2 = tpu.iota {dimensions = array<i32: 0>} : vector<16x128xi32>
    %3 = vector.broadcast %1 : i32 to vector<16x128xi32>
    %4 = arith.addi %2, %3 : vector<16x128xi32>
    %5 = tpu.iota {dimensions = array<i32: 1>} : vector<16x128xi32>
    %c128_i32 = arith.constant 128 : i32
    %6 = vector.broadcast %c128_i32 : i32 to vector<16x128xi32>
    %7 = arith.muli %4, %6 : vector<16x128xi32>
    %8 = arith.addi %7, %5 : vector<16x128xi32>
    %c0_1 = arith.constant 0 : index
    %9 = memref.load %arg1[%c0_1] : memref<1xi32, #tpu.memory_space<smem>>
    %c-1640531527_i32 = arith.constant -1640531527 : i32
    %10 = arith.muli %9, %c-1640531527_i32 : i32
    %11 = vector.broadcast %10 : i32 to vector<16x128xi32>
    %12 = arith.xori %8, %11 : vector<16x128xi32>
    %c16_i32_2 = arith.constant 16 : i32
    %13 = vector.broadcast %c16_i32_2 : i32 to vector<16x128xi32>
    %14 = arith.shrui %12, %13 : vector<16x128xi32>
    %15 = arith.xori %12, %14 : vector<16x128xi32>
    %c2146121005_i32 = arith.constant 2146121005 : i32
    %16 = vector.broadcast %c2146121005_i32 : i32 to vector<16x128xi32>
    %17 = arith.muli %15, %16 : vector<16x128xi32>
    %c15_i32 = arith.constant 15 : i32
    %18 = vector.broadcast %c15_i32 : i32 to vector<16x128xi32>
    %19 = arith.shrui %17, %18 : vector<16x128xi32>
    %20 = arith.xori %17, %19 : vector<16x128xi32>
    %c-2073254261_i32 = arith.constant -2073254261 : i32
    %21 = vector.broadcast %c-2073254261_i32 : i32 to vector<16x128xi32>
    %22 = arith.muli %20, %21 : vector<16x128xi32>
    %c16_i32_3 = arith.constant 16 : i32
    %23 = vector.broadcast %c16_i32_3 : i32 to vector<16x128xi32>
    %24 = arith.shrui %22, %23 : vector<16x128xi32>
    %25 = arith.xori %22, %24 : vector<16x128xi32>
    %c1288490189_i32 = arith.constant 1288490189 : i32
    %26 = vector.broadcast %c1288490189_i32 : i32 to vector<16x128xi32>
    %27 = arith.cmpi uge, %25, %26 : vector<16x128xi32>
    %cst = arith.constant 1.42857146 : f32
    %28 = vector.broadcast %cst : f32 to vector<16x128xf32>
    %29 = arith.mulf %0, %28 : vector<16x128xf32>
    %cst_4 = arith.constant 0.000000e+00 : f32
    %30 = vector.broadcast %cst_4 : f32 to vector<16x128xf32>
    %31 = arith.select %27, %29, %30 : vector<16x128xi1>, vector<16x128xf32>
    %c0_5 = arith.constant 0 : index
    %c0_6 = arith.constant 0 : index
    %32 = vector.load %arg3[%c0_5, %c0_6] : memref<16x128xf32, #tpu.memory_space<vmem>>, vector<16x128xf32>
    tpu.vector_store %arg3[%c0_5, %c0_6], %31 {strides = array<i32>} : memref<16x128xf32, #tpu.memory_space<vmem>>, vector<16x128xf32>,
    return
  }
  func.func @transform_0(%arg0: i32) -> i32 {
    %c0_i32 = arith.constant 0 : i32
    %c0_i32_0 = arith.constant 0 : i32
    return %c0_i32 : i32
  }
  func.func @transform_1(%arg0: i32) -> (i32, i32) {
    %c0_i32 = arith.constant 0 : i32
    %c0_i32_0 = arith.constant 0 : i32
    return %arg0, %c0_i32 : i32, i32
  }
  func.func @transform_2(%arg0: i32) -> (i32, i32) {
    %c0_i32 = arith.constant 0 : i32
    %c0_i32_0 = arith.constant 0 : i32
    return %arg0, %c0_i32 : i32, i32
  }
}

</mosaic_0001>

<bundles_post_ra>
// kernel: tpu_custom_call.1
= control target key start
LH: loop header
LB: loop body
LE: loop exit
PB: predicated region body
PF: predicated region fallthrough
CT: control target
= control target key end

     0   :  { %8 = vsyncpa [#allocation4], 0  ;;  %s170_s0 = inlined_call_operand.<no memory space> [shape: s32[1], index: 0, kind: input, shape index: {}]   ;;  %s171_s1 = inlined_call_operand.hbm [shape: f32[16,128], index: 1, kind: input, shape index: {}, may-alias: {1,2}]   ;;  %s172_s2 = inlined_call_operand.hbm [shape: f32[16,128], index: 2, kind: output, shape index: {}, may-alias: {1,2}]  }
   0x1   :  { %9 = vsyncpa [#allocation5], 0  ;;  %s136_s9 = smov [#allocation3]  }
   0x2   :  { %s17_s10 = sshll.u32 %s136_s9, 4  ;;  %s18_s10 = int_to_ptr.vmem [resolvable:$true] %s17_s10 }
   0x3   :  { %s100_s11 = scalar_lea.vmem %s18_s10, 256  ;;  %p105_p1 = scmp.lt.s32.totalorder %s18_s10, %s18_s10 }
   0x4   :  { %p101_p0 = scmp.ne.s32.totalorder %s18_s10, %s100_s11  ;;  %p106_p2 = scmp.lt.s32.totalorder %s100_s11, %s100_s11 }
   0x6   :  { %p107_p3 = por %p106_p2, %p105_p1 }
   0x8   :  { %p108_p4 = pnand %p107_p3, %p101_p0 }
   0xa   :  { %111 = shalt.err (!%p108_p4)
}
   0xb   :  { %s137_s12 = smov 128   ;;  %s138_s13 = smov 8  }
   0xc   :  { %23 = dma.hbm_to_vmem [thread:$0]  %s171_s1, 256, %s18_s10, [#allocation4], %s137_s12, %s137_s12, %s138_s13  }
   0xd   :  { %132 = dma.done.wait [#allocation4], 256  }
   0xe   :  { %133 = vsyncadd [#allocation4], 4294967040  ;;  %v30_v0 = vlaneseq  ;;  %s43_s18 = smul.u32 2654435769, %s170_s0  ;;  %v27_v20 = vld [vmem:[#allocation3] sm:$0xff]  ;;  %v28_v24 = vld [vmem:[#allocation3 + $0x8] sm:$0xff] }
   0xf   :  { %v65_v26 = vmul.f32 1.4285715, %v27_v20  ;;  %v66_v29 = vmul.f32 1.4285715, %v28_v24  ;;  %s139_s0 = smov [#allocation6]  }
  0x10   :  { %v31_v1 = vshrl.u32 %v30_v0, 7  ;;  %v37_v2 = vand.u32 127, %v30_v0  ;;  %v44_v5 = vstv %s43_s18  ;;  %s76_s1 = sshll.u32 %s139_s0, 4  ;;  %s77_s1 = int_to_ptr.vmem [resolvable:$true] %s76_s1 }
  0x11   :  { %s112_s19 = scalar_lea.vmem %s77_s1, 256  ;;  %p117_p6 = scmp.lt.s32.totalorder %s77_s1, %s77_s1 }
  0x12   :  { %v38_v3 = vmul.u32 128, %v31_v1  ;;  %v32_v4 = vadd.s32 8, %v31_v1  ;;  %p113_p5 = scmp.ne.s32.totalorder %s77_s1, %s112_s19  ;;  %p118_p7 = scmp.lt.s32.totalorder %s112_s19, %s112_s19 }
  0x14   :  { %v40_v6 = vadd.s32 %v38_v3, %v37_v2  ;;  %v39_v7 = vmul.u32 128, %v32_v4  ;;  %p119_p8 = por %p118_p7, %p117_p6 }
  0x16   :  { %v45_v8 = vxor.u32 %v44_v5, %v40_v6  ;;  %v41_v9 = vadd.s32 %v39_v7, %v37_v2  ;;  %p120_p9 = pnand %p119_p8, %p113_p5 }
  0x18   :  { %v47_v10 = vshrl.u32 %v45_v8, 16  ;;  %v46_v11 = vxor.u32 %v44_v5, %v41_v9 }
  0x1a   :  { %v49_v12 = vxor.u32 %v47_v10, %v45_v8  ;;  %v48_v13 = vshrl.u32 %v46_v11, 16 }
  0x1c   :  { %v51_v14 = vmul.u32 2146121005, %v49_v12  ;;  %v50_v15 = vxor.u32 %v48_v13, %v46_v11 }
  0x1e   :  { %v53_v16 = vshrl.u32 %v51_v14, 15  ;;  %v52_v17 = vmul.u32 2146121005, %v50_v15 }
  0x20   :  { %v55_v18 = vxor.u32 %v53_v16, %v51_v14  ;;  %v54_v19 = vshrl.u32 %v52_v17, 15 }
  0x22   :  { %v57_v21 = vmul.u32 2221713035, %v55_v18  ;;  %v56_v22 = vxor.u32 %v54_v19, %v52_v17 }
  0x24   :  { %v59_v23 = vshrl.u32 %v57_v21, 16  ;;  %v58_v25 = vmul.u32 2221713035, %v56_v22 }
  0x26   :  { %v61_v27 = vxor.u32 %v59_v23, %v57_v21  ;;  %v60_v28 = vshrl.u32 %v58_v25, 16 }
  0x28   :  { %vm63_vm0 = vcmp.ge.u32.totalorder %v61_v27, 1288490189  ;;  %v62_v30 = vxor.u32 %v60_v28, %v58_v25 }
  0x29   :  { %v67_v31 = vsel %vm63_vm0, %v65_v26, 0.0 }
  0x2a   :  { %69 = vst [vmem:[#allocation6] sm:$0xff] %v67_v31  ;;  %vm64_vm1 = vcmp.ge.u32.totalorder %v62_v30, 1288490189 }
  0x2b   :  { %v68_v32 = vsel %vm64_vm1, %v66_v29, 0.0 }
  0x2c   :  { %70 = vst [vmem:[#allocation6 + $0x8] sm:$0xff] %v68_v32 }
  0x2d   :  { %123 = shalt.err (!%p120_p9)
}
  0x2e   :  { %82 = dma.vmem_to_hbm [thread:$0]  %s77_s1, 256, %s172_s2, [#allocation5], %s137_s12, %s137_s12, %s138_s13  }
  0x2f   :  { %134 = dma.done.wait [#allocation5], 256  }
  0x30   :  { %135 = vsyncadd [#allocation5], 4294967040 }
  0x31   :  { %86 = vsyncpa [#allocation4], 1 }
  0x32   :  { %87 = vsyncpa [#allocation5], 1 }

</bundles_post_ra>
